<compile_context>
chip_gen: v6e
topology: v6e:2x2x1
jax: 0.10.0
libtpu: 0.0.40
codegen_flags: <defaults>
</compile_context>

<pallas_src>
import functools

import jax
import jax.numpy as jnp
from jax.experimental import pallas as pl
from jax.experimental.pallas import tpu as pltpu


def _round_up(x, m):
    return (x + m - 1) // m * m


# ---------------------------------------------------------------------------
# Kernel: one batch row-tile (grid axis 0, "parallel") x one reaction chunk
# (grid axis 1, "arbitrary"), accumulated into an f32 VMEM scratch.
# ---------------------------------------------------------------------------
def _assembler_kernel(*refs, order, den_mode, compute_dtype):
    if den_mode == "none":
        y_ref, r_ref, g_ref, kmat_ref, pmat_ref, o_ref, acc_ref = refs
        den_ref = None
    else:
        y_ref, r_ref, den_ref, g_ref, kmat_ref, pmat_ref, o_ref, acc_ref = refs

    kc = pl.program_id(1)

    @pl.when(kc == 0)
    def _init():
        acc_ref[...] = jnp.zeros_like(acc_ref)

    y = y_ref[...].astype(compute_dtype)                 # (tb, n_spec)
    r = r_ref[...]                                       # (tb, n_rates)
    if den_mode == "rate":                               # per-rate den: before selection (torch order)
        r = r * den_ref[...]
    r = r.astype(compute_dtype)

    # Reactant gathers: y[:, inds_r[:, i]] == y @ Gi  (one-hot columns of this chunk)
    t = jnp.dot(y, g_ref[0], preferred_element_type=jnp.float32)        # (tb, tr)
    if order != 1:
        t = t * jnp.dot(y, g_ref[1], preferred_element_type=jnp.float32)

    # Rate selection + sign: rates[:, inds_k] * rate_sign == rates @ Kmat (this chunk)
    kr = jnp.dot(r, kmat_ref[...], preferred_element_type=jnp.float32)  # (tb, tr)
    if den_mode == "row":                                # per-row den commutes with selection
        kr = kr * den_ref[...]

    terms = t * kr                                       # (tb, tr) f32

    # scatter_add over inds_p == terms @ Pmat (one-hot rows), accumulated over chunks
    acc_ref[...] += jnp.dot(terms.astype(compute_dtype), pmat_ref[...],
                            preferred_element_type=jnp.float32)

    @pl.when(kc == pl.num_programs(1) - 1)
    def _finalize():
        o_ref[...] = acc_ref[...].astype(o_ref.dtype)


# ---------------------------------------------------------------------------
# Wrapper (constant one-hot matrices are built once in __init__; plain-JAX glue)
# ---------------------------------------------------------------------------
class AssemblerPallas:
    """Pallas TPU equivalent of westlake.assemblers.Assembler.forward."""

    def __init__(self, *, inds_r, inds_p, inds_k, rate_sign, order, n_spec, n_rates,
                 compute_dtype=jnp.bfloat16, max_batch_tile=256, reaction_tile=256):
        self.order = int(order)
        self.n_spec = int(n_spec)
        self.n_rates = int(n_rates)
        self.compute_dtype = compute_dtype
        self.max_batch_tile = int(max_batch_tile)

        inds_p = jnp.asarray(inds_p, jnp.int32).reshape(-1)
        n_react = int(inds_p.shape[0])
        self.n_react = n_react

        inds_r = jnp.asarray(inds_r, jnp.int32)
        inds_r = inds_r.reshape(n_react) if self.order == 1 else inds_r.reshape(n_react, 2)

        # Reaction-chunk width (lane-dense multiple of 128); the reaction axis is padded
        # with zero columns/rows once here, never per call.
        tr = max(128, _round_up(min(int(reaction_tile), max(n_react, 1)), 128))
        rp = _round_up(n_react, tr)
        self.tr, self.n_react_pad, self.nk = tr, rp, rp // tr

        ar = jnp.arange(n_react)
        cdt = compute_dtype

        # One-hot reactant gather matrices, stacked as (order, n_spec, rp).
        g = jnp.zeros((self.order, self.n_spec, rp), cdt)
        if self.order == 1:
            g = g.at[0, inds_r, ar].set(1.0)
        else:
            g = g.at[0, inds_r[:, 0], ar].set(1.0)
            g = g.at[1, inds_r[:, 1], ar].set(1.0)
        self.g = g

        # Rate selection / sign matrix (identity when inds_k is None).
        if inds_k is None:
            if self.n_rates != n_react:
                raise ValueError("inds_k=None requires n_rates == n_react")
            kmat = jnp.zeros((self.n_rates, rp), cdt).at[ar, ar].set(1.0)
        else:
            inds_k = jnp.asarray(inds_k, jnp.int32).reshape(-1)
            kmat = jnp.zeros((self.n_rates, rp), cdt).at[inds_k, ar].set(
                jnp.asarray(rate_sign).astype(cdt))
        self.kmat = kmat

        # One-hot production scatter matrix: Pmat[j, inds_p[j]] = 1.
        self.pmat = jnp.zeros((rp, self.n_spec), cdt).at[ar, inds_p].set(1.0)

    # TODO(synk): jacobain() (scatter_add into an n_spec*n_spec matrix via inds_pr) is
    # not part of the forward pass and is left unimplemented.

    def __call__(self, y_in, rates, den_norm=None):
        y_in = jnp.asarray(y_in)
        rates = jnp.asarray(rates)
        squeeze = (y_in.ndim == 1)
        if squeeze:
            y_in = y_in[None, :]
        if rates.ndim == 1:
            rates = rates[None, :]
        B = y_in.shape[0]
        if y_in.shape != (B, self.n_spec):
            raise ValueError(f"y_in must be (B, {self.n_spec}), got {y_in.shape}")
        if rates.shape != (B, self.n_rates):
            raise ValueError(f"rates must be (B, {self.n_rates}), got {rates.shape}")

        # den_norm handling (only used for order-2, mirroring assemble_rates()).
        den_mode, den = "none", None
        if self.order == 2 and den_norm is not None:
            d = jnp.asarray(den_norm, y_in.dtype)
            if d.size == 1:
                den_mode, den = "row", jnp.broadcast_to(d.reshape(1, 1), (B, 1))
            elif d.ndim == 2 and d.shape == (B, 1):
                den_mode, den = "row", d
            else:  # per-rate density normalisation, exact torch broadcast semantics
                den_mode, den = "rate", jnp.broadcast_to(d, (B, self.n_rates))

        # Batch row tile: multiple of 8 sublanes, default cap 256 (MXU-friendly on
        # v6e/v7x).  Batch is zero-padded only when not already tile-aligned.
        tb = min(self.max_batch_tile, _round_up(B, 8))
        bp = _round_up(B, tb)

        def bpad(x):
            if bp == B:
                return x
            return jnp.zeros((bp,) + x.shape[1:], x.dtype).at[:B].set(x)

        yp, rtp = bpad(y_in), bpad(rates)

        row_spec = lambda cols: pl.BlockSpec((tb, cols), lambda i, k: (i, 0))
        operands = [yp, rtp]
        in_specs = [row_spec(self.n_spec), row_spec(self.n_rates)]
        den_cols = 0
        if den_mode != "none":
            den_cols = den.shape[1]
            operands.append(bpad(den))
            in_specs.append(row_spec(den_cols))
        operands += [self.g, self.kmat, self.pmat]
        in_specs += [
            pl.BlockSpec((self.order, self.n_spec, self.tr), lambda i, k: (0, 0, k)),
            pl.BlockSpec((self.n_rates, self.tr), lambda i, k: (0, k)),
            pl.BlockSpec((self.tr, self.n_spec), lambda i, k: (k, 0)),
        ]

        # VMEM budget: double-buffered tiles + f32 accumulator scratch, x4 headroom.
        ib = y_in.dtype.itemsize
        cb = jnp.dtype(self.compute_dtype).itemsize
        tile_bytes = (tb * (2 * self.n_spec + self.n_rates + den_cols) * ib
                      + (self.order * self.n_spec + self.n_rates + self.n_spec)
                      * self.tr * cb)
        vmem_limit = int(min(max(4 * (2 * tile_bytes + tb * self.n_spec * 4),
                                 32 * 1024 * 1024), 64 * 1024 * 1024))

        kern = functools.partial(_assembler_kernel, order=self.order,
                                 den_mode=den_mode, compute_dtype=self.compute_dtype)

        out = pl.pallas_call(
            kern,
            out_shape=jax.ShapeDtypeStruct((bp, self.n_spec), y_in.dtype),
            grid=(bp // tb, self.nk),
            in_specs=in_specs,
            out_specs=pl.BlockSpec((tb, self.n_spec), lambda i, k: (i, 0)),
            scratch_shapes=[pltpu.VMEM((tb, self.n_spec), jnp.float32)],
            compiler_params=pltpu.CompilerParams(
                dimension_semantics=("parallel", "arbitrary"),
                vmem_limit_bytes=vmem_limit),
        )(*operands)

        if bp != B:
            out = out[:B]
        return out[0] if squeeze else out


# ---------------------------------------------------------------------------
# Pure-JAX reference (mirrors the PyTorch forward exactly)
# ---------------------------------------------------------------------------
def reference_forward(y_in, rates, den_norm, *, inds_r, inds_p, inds_k,
                      rate_sign, order):
    if order == 2 and den_norm is not None:
        rates = rates * den_norm
    if inds_k is not None:
        rates = rates[:, inds_k] * rate_sign
    terms = y_in[:, inds_r]
    if order != 1:
        terms = jnp.prod(terms, axis=-1)
    terms = terms * rates
    y_out = jnp.zeros_like(y_in)
    y_out = y_out.at[:, inds_p].add(terms)   # scatter-add with duplicate accumulation
    return y_out


# ---------------------------------------------------------------------------
if __name__ == "__main__":
    key = jax.random.PRNGKey(0)
    B, n_spec, n_react, n_rates = 16, 40, 300, 160
    order = 2

    k1, k2, k3, k4, k5, k6, k7 = jax.random.split(key, 7)
    inds_r = jax.random.randint(k1, (n_react, 2), 0, n_spec)      # reactant indices
    inds_p = jax.random.randint(k2, (n_react,), 0, n_spec)        # product indices
    inds_k = jax.random.randint(k3, (n_react,), 0, n_rates)       # rate selection
    rate_sign = jnp.where(jax.random.bernoulli(k4, 0.5, (n_react,)), 1.0, -1.0)

    y_in = jax.random.uniform(k5, (B, n_spec), jnp.float32, 0.1, 1.0)
    rates = jax.random.uniform(k6, (B, n_rates), jnp.float32, 0.1, 1.0)
    den_norm = jax.random.uniform(k7, (B, 1), jnp.float32, 0.5, 2.0)

    y_ref = reference_forward(y_in, rates, den_norm, inds_r=inds_r, inds_p=inds_p,
                              inds_k=inds_k, rate_sign=rate_sign, order=order)

    # bf16 constants/compute (default) -- 2 batch tiles x 3 reaction chunks exercised.
    asm = AssemblerPallas(inds_r=inds_r, inds_p=inds_p, inds_k=inds_k,
                          rate_sign=rate_sign, order=order,
                          n_spec=n_spec, n_rates=n_rates,
                          max_batch_tile=8, reaction_tile=128)
    y_out = jax.block_until_ready(asm(y_in, rates, den_norm))
    assert y_out.shape == y_in.shape and y_out.dtype == y_in.dtype
    # bf16 rounding of y/rates/terms -> loose tolerance
    assert jnp.allclose(y_out, y_ref, atol=1e-1, rtol=1e-1), "order-2 bf16 mismatch"

    # f32 constants/compute -- tighter structural check (matmul gather/scatter only
    # reorders accumulation; tolerance still allows MXU pass rounding).
    asm32 = AssemblerPallas(inds_r=inds_r, inds_p=inds_p, inds_k=inds_k,
                            rate_sign=rate_sign, order=order,
                            n_spec=n_spec, n_rates=n_rates,
                            compute_dtype=jnp.float32,
                            max_batch_tile=8, reaction_tile=128)
    y32 = jax.block_until_ready(asm32(y_in, rates, den_norm))
    assert jnp.allclose(y32, y_ref, atol=5e-2, rtol=5e-2), "order-2 f32 mismatch"

    # 1-D squeeze path (padded to 8 sublane rows internally)
    y1d = jax.block_until_ready(asm(y_in[0], rates[0], den_norm[0]))
    assert y1d.shape == (n_spec,)
    assert jnp.allclose(y1d, y_ref[0], atol=1e-1, rtol=1e-1), "1-D path mismatch"

    # order-1 / inds_k=None path
    asm1 = AssemblerPallas(inds_r=inds_r[:, 0], inds_p=inds_p, inds_k=None,
                           rate_sign=None, order=1, n_spec=n_spec, n_rates=n_react,
                           compute_dtype=jnp.float32,
                           max_batch_tile=8, reaction_tile=128)
    rates1 = jax.random.uniform(k6, (B, n_react), jnp.float32, 0.1, 1.0)
    y1 = jax.block_until_ready(asm1(y_in, rates1, None))
    y1_ref = reference_forward(y_in, rates1, None, inds_r=inds_r[:, 0], inds_p=inds_p,
                               inds_k=None, rate_sign=None, order=1)
    assert jnp.allclose(y1, y1_ref, atol=5e-2, rtol=5e-2), "order-1 mismatch"

    print("KERNEL_OK")
</pallas_src>

<mosaic_0001>
module attributes {stable_mosaic.version = 11 : i64} {
  func.func @_assembler_kernel(%arg0: i32, %arg1: i32, %arg2: memref<8x40xf32, #tpu.memory_space<vmem>>, %arg3: memref<8x160xf32, #tpu.memory_space<vmem>>, %arg4: memref<8x1xf32, #tpu.memory_space<vmem>>, %arg5: memref<2x40x128xbf16, #tpu.memory_space<vmem>>, %arg6: memref<160x128xbf16, #tpu.memory_space<vmem>>, %arg7: memref<128x40xbf16, #tpu.memory_space<vmem>>, %arg8: memref<8x40xf32, #tpu.memory_space<vmem>>, %arg9: memref<8x40xf32, #tpu.memory_space<vmem>>) attributes {dimension_semantics = [#tpu.dimension_semantics<parallel>, #tpu.dimension_semantics<arbitrary>], iteration_bounds = array<i64: 2, 3>, scalar_prefetch = 0 : i64, scratch_operands = 1 : i64, tpu.core_type = #tpu.core_type<tc>, window_params = [{transform_indices = @transform_0, window_bounds = array<i64: 8, 40>}, {transform_indices = @transform_1, window_bounds = array<i64: 8, 160>}, {transform_indices = @transform_2, window_bounds = array<i64: 8, 1>}, {transform_indices = @transform_3, window_bounds = array<i64: 2, 40, 128>}, {transform_indices = @transform_4, window_bounds = array<i64: 160, 128>}, {transform_indices = @transform_5, window_bounds = array<i64: 128, 40>}, {transform_indices = @transform_6, window_bounds = array<i64: 8, 40>}]} {
    %c0_i32 = arith.constant 0 : i32
    %0 = arith.cmpi eq, %arg1, %c0_i32 : i32
    %1 = arith.extui %0 : i1 to i32
    %c0_i32_0 = arith.constant 0 : i32
    %2 = arith.cmpi ne, %1, %c0_i32_0 : i32
    scf.if %2 {
      %cst_23 = arith.constant 0.000000e+00 : f32
      %29 = vector.broadcast %cst_23 : f32 to vector<8x40xf32>
      %c0_24 = arith.constant 0 : index
      %c0_25 = arith.constant 0 : index
      %30 = vector.load %arg9[%c0_24, %c0_25] : memref<8x40xf32, #tpu.memory_space<vmem>>, vector<8x40xf32>
      tpu.vector_store %arg9[%c0_24, %c0_25], %29 {strides = array<i32>} : memref<8x40xf32, #tpu.memory_space<vmem>>, vector<8x40xf32>,
    } else {
    }
    %c0 = arith.constant 0 : index
    %c0_1 = arith.constant 0 : index
    %3 = vector.load %arg2[%c0, %c0_1] : memref<8x40xf32, #tpu.memory_space<vmem>>, vector<8x40xf32>
    %4 = arith.truncf %3 : vector<8x40xf32> to vector<8x40xbf16>
    %c0_2 = arith.constant 0 : index
    %c0_3 = arith.constant 0 : index
    %5 = vector.load %arg3[%c0_2, %c0_3] : memref<8x160xf32, #tpu.memory_space<vmem>>, vector<8x160xf32>
    %6 = arith.truncf %5 : vector<8x160xf32> to vector<8x160xbf16>
    %c0_4 = arith.constant 0 : index
    %c0_5 = arith.constant 0 : index
    %c0_6 = arith.constant 0 : index
    %7 = vector.load %arg5[%c0_4, %c0_5, %c0_6] : memref<2x40x128xbf16, #tpu.memory_space<vmem>>, vector<1x40x128xbf16>
    %8 = vector.shape_cast %7 : vector<1x40x128xbf16> to vector<40x128xbf16>
    %cst = arith.constant dense<0.000000e+00> : vector<8x128xf32>
    %9 = tpu.matmul %4, %8, %cst {dimension_numbers = #tpu.dot_dimension_numbers<[1], [0], [0], [1], [0, 0, 1, 1], [], []>} : vector<8x40xbf16>, vector<40x128xbf16>, vector<8x128xf32> -> vector<8x128xf32>
    %c1 = arith.constant 1 : index
    %c0_7 = arith.constant 0 : index
    %c0_8 = arith.constant 0 : index
    %10 = vector.load %arg5[%c1, %c0_7, %c0_8] : memref<2x40x128xbf16, #tpu.memory_space<vmem>>, vector<1x40x128xbf16>
    %11 = vector.shape_cast %10 : vector<1x40x128xbf16> to vector<40x128xbf16>
    %cst_9 = arith.constant dense<0.000000e+00> : vector<8x128xf32>
    %12 = tpu.matmul %4, %11, %cst_9 {dimension_numbers = #tpu.dot_dimension_numbers<[1], [0], [0], [1], [0, 0, 1, 1], [], []>} : vector<8x40xbf16>, vector<40x128xbf16>, vector<8x128xf32> -> vector<8x128xf32>
    %13 = arith.mulf %9, %12 : vector<8x128xf32>
    %c0_10 = arith.constant 0 : index
    %c0_11 = arith.constant 0 : index
    %14 = vector.load %arg6[%c0_10, %c0_11] : memref<160x128xbf16, #tpu.memory_space<vmem>>, vector<160x128xbf16>
    %cst_12 = arith.constant dense<0.000000e+00> : vector<8x128xf32>
    %15 = tpu.matmul %6, %14, %cst_12 {dimension_numbers = #tpu.dot_dimension_numbers<[1], [0], [0], [1], [0, 0, 1, 1], [], []>} : vector<8x160xbf16>, vector<160x128xbf16>, vector<8x128xf32> -> vector<8x128xf32>
    %c0_13 = arith.constant 0 : index
    %c0_14 = arith.constant 0 : index
    %16 = vector.load %arg4[%c0_13, %c0_14] : memref<8x1xf32, #tpu.memory_space<vmem>>, vector<8x1xf32>
    %17 = vector.broadcast %16 : vector<8x1xf32> to vector<8x128xf32>
    %18 = arith.mulf %15, %17 : vector<8x128xf32>
    %19 = arith.mulf %13, %18 : vector<8x128xf32>
    %c0_15 = arith.constant 0 : index
    %c0_16 = arith.constant 0 : index
    %20 = vector.load %arg9[%c0_15, %c0_16] : memref<8x40xf32, #tpu.memory_space<vmem>>, vector<8x40xf32>
    %21 = arith.truncf %19 : vector<8x128xf32> to vector<8x128xbf16>
    %c0_17 = arith.constant 0 : index
    %c0_18 = arith.constant 0 : index
    %22 = vector.load %arg7[%c0_17, %c0_18] : memref<128x40xbf16, #tpu.memory_space<vmem>>, vector<128x40xbf16>
    %cst_19 = arith.constant dense<0.000000e+00> : vector<8x40xf32>
    %23 = tpu.matmul %21, %22, %cst_19 {dimension_numbers = #tpu.dot_dimension_numbers<[1], [0], [0], [1], [0, 0, 1, 1], [], []>} : vector<8x128xbf16>, vector<128x40xbf16>, vector<8x40xf32> -> vector<8x40xf32>
    %24 = arith.addf %20, %23 : vector<8x40xf32>
    %c0_20 = arith.constant 0 : index
    %c0_21 = arith.constant 0 : index
    %25 = vector.load %arg9[%c0_20, %c0_21] : memref<8x40xf32, #tpu.memory_space<vmem>>, vector<8x40xf32>
    tpu.vector_store %arg9[%c0_20, %c0_21], %24 {strides = array<i32>} : memref<8x40xf32, #tpu.memory_space<vmem>>, vector<8x40xf32>,
    %c2_i32 = arith.constant 2 : i32
    %26 = arith.cmpi eq, %arg1, %c2_i32 : i32
    %27 = arith.extui %26 : i1 to i32
    %c0_i32_22 = arith.constant 0 : i32
    %28 = arith.cmpi ne, %27, %c0_i32_22 : i32
    scf.if %28 {
      %c0_23 = arith.constant 0 : index
      %c0_24 = arith.constant 0 : index
      %29 = vector.load %arg9[%c0_23, %c0_24] : memref<8x40xf32, #tpu.memory_space<vmem>>, vector<8x40xf32>
      %c0_25 = arith.constant 0 : index
      %c0_26 = arith.constant 0 : index
      %30 = vector.load %arg8[%c0_25, %c0_26] : memref<8x40xf32, #tpu.memory_space<vmem>>, vector<8x40xf32>
      tpu.vector_store %arg8[%c0_25, %c0_26], %29 {strides = array<i32>} : memref<8x40xf32, #tpu.memory_space<vmem>>, vector<8x40xf32>,
    } else {
    }
    return
  }
  func.func @transform_0(%arg0: i32, %arg1: i32) -> (i32, i32) {
    %c0_i32 = arith.constant 0 : i32
    %c0_i32_0 = arith.constant 0 : i32
    return %arg0, %c0_i32 : i32, i32
  }
  func.func @transform_1(%arg0: i32, %arg1: i32) -> (i32, i32) {
    %c0_i32 = arith.constant 0 : i32
    %c0_i32_0 = arith.constant 0 : i32
    return %arg0, %c0_i32 : i32, i32
  }
  func.func @transform_2(%arg0: i32, %arg1: i32) -> (i32, i32) {
    %c0_i32 = arith.constant 0 : i32
    %c0_i32_0 = arith.constant 0 : i32
    return %arg0, %c0_i32 : i32, i32
  }
  func.func @transform_3(%arg0: i32, %arg1: i32) -> (i32, i32, i32) {
    %c0_i32 = arith.constant 0 : i32
    %c0_i32_0 = arith.constant 0 : i32
    %c0_i32_1 = arith.constant 0 : i32
    return %c0_i32, %c0_i32_0, %arg1 : i32, i32, i32
  }
  func.func @transform_4(%arg0: i32, %arg1: i32) -> (i32, i32) {
    %c0_i32 = arith.constant 0 : i32
    %c0_i32_0 = arith.constant 0 : i32
    return %c0_i32, %arg1 : i32, i32
  }
  func.func @transform_5(%arg0: i32, %arg1: i32) -> (i32, i32) {
    %c0_i32 = arith.constant 0 : i32
    %c0_i32_0 = arith.constant 0 : i32
    return %arg1, %c0_i32 : i32, i32
  }
  func.func @transform_6(%arg0: i32, %arg1: i32) -> (i32, i32) {
    %c0_i32 = arith.constant 0 : i32
    %c0_i32_0 = arith.constant 0 : i32
    return %arg0, %c0_i32 : i32, i32
  }
}

</mosaic_0001>

<bundles_post_ra>
// kernel: tpu_custom_call.1
= control target key start
LH: loop header
LB: loop body
LE: loop exit
PB: predicated region body
PF: predicated region fallthrough
CT: control target
= control target key end

     0   :  { %s1909_s0 = inlined_call_operand.hbm [shape: f32[16,40], index: 0, kind: input, shape index: {}]   ;;  %s1910_s1 = inlined_call_operand.vmem [shape: f32[16,160], index: 1, kind: input, shape index: {}]   ;;  %s1911_s2 = inlined_call_operand.vmem [shape: f32[16,1], index: 2, kind: input, shape index: {}]   ;;  %s1912_s3 = inlined_call_operand.hbm [shape: bf16[2,40,384], index: 3, kind: input, shape index: {}]   ;;  %s1913_s4 = inlined_call_operand.vmem [shape: bf16[160,384], index: 4, kind: input, shape index: {}]   ;;  %s1914_s5 = inlined_call_operand.vmem [shape: bf16[384,40], index: 5, kind: input, shape index: {}]   ;;  %s1915_s6 = inlined_call_operand.hbm [shape: f32[16,40], index: 6, kind: output, shape index: {}]  }
   0x1   :  { %1926 = sst [smem:[#allocation22_spill]] %s1909_s0 }
   0x2   :  { %1927 = sst [smem:[#allocation23_spill]] %s1912_s3 }
   0x3   :  { %1928 = sst [smem:[#allocation24_spill]] %s1913_s4 }
   0x4   :  { %1929 = sst [smem:[#allocation25_spill]] %s1914_s5 }
   0x5   :  { %1930 = sst [smem:[#allocation26_spill]] %s1915_s6 }
   0x6   :  { %11 = vsyncpa [#allocation4], 0 }
   0x7   :  { %13 = vsyncpa [#allocation4 + $0x1], 0 }
   0x8   :  { %14 = vsyncpa [#allocation7], 0 }
   0x9   :  { %16 = vsyncpa [#allocation7 + $0x1], 0 }
   0xa   :  { %17 = vsyncpa [#allocation5], 0 }
   0xb   :  { %19 = vsyncpa [#allocation5 + $0x1], 0  ;;  %s1550_s21 = smov 0   ;;  %s1552_s22 = smov 0  }
   0xc   :  { %s1554_s23 = smov 0   ;;  %s1556_s24 = smov 0  }
   0xd   :  { %s1558_s25 = smov 0   ;;  %s1560_s26 = smov 0  }
   0xe   :  { %s1562_s27 = smov 0   ;;  %s1564_s28 = smov 0  }
   0xf   :  { %s1566_s29 = smov 0   ;;  %s1568_s30 = smov 0  }
  0x10   :  { %s1570_s7 = smov 0  }
  0x11 LB: > { %1931 = sst [smem:[#allocation13_spill]] %s1475_s24  ;;  %s1080_s8 = sadd.s32 4294967295, %s1503_s7   ;;  %s1503_s7 = sphi %s1570_s7, %s25_s7   ;;  %s1499_s30 = sphi %s1568_s30, %s1968_s30   ;;  %s1495_s29 = sphi %s1566_s29, %s1960_s29   ;;  %s1491_s28 = sphi %s1564_s28, %s1959_s28   ;;  %s1487_s27 = sphi %s1562_s27, %s1958_s27   ;;  %s1483_s26 = sphi %s1560_s26, %s1967_s26   ;;  %s1479_s25 = sphi %s1558_s25, %s1966_s25   ;;  %s1475_s24 = sphi %s1556_s24, %s1965_s24   ;;  %s1471_s23 = sphi %s1554_s23, %s1964_s23   ;;  %s1467_s22 = sphi %s1552_s22, %s1963_s22   ;;  %s1463_s21 = sphi %s1550_s21, %s1962_s21  }
  0x12   : > { %1932 = sst [smem:[#allocation14_spill]] %s1495_s29  ;;  %s1081_s9 = sadd.s32 4294967294, %s1503_s7  }
  0x13   : > { %1933 = sst [smem:[#allocation15_spill]] %s1499_s30  ;;  %s34_s10 = sadd.s32 1, %s1495_s29 }
  0x14   : > { %s37_s11 = sadd.s32 1, %s1499_s30  ;;  %p35_p0 = scmp.ge.s32.totalorder %s34_s10, 3 }
  0x15   : > { %s44_s12 = sadd.s32 1, %s1483_s26  ;;  %p51_p1 = scmp.ne.s32.totalorder %s1483_s26, %s1479_s25 }
  0x16   : > { %p52_p2 = scmp.eq.s32.totalorder %s1503_s7, 0  ;;  %s1970_s10 = smov (%p35_p0, %s34_s10), 0 }
  0x17   : > { %1934 = sst [smem:[#allocation16_spill]] %s1970_s10  ;;  %s1972_s11 = smov (!%p35_p0, %s37_s11), %s1499_s30 }
  0x18   : > { %p1621_p3 = por %p52_p2, %p51_p1  ;;  %p1918_p4 = scmp.ne.s32.totalorder %s1479_s25, %s1475_s24 }
  0x19   : > { %p39_p5 = scmp.ge.s32.totalorder %s1972_s11, 2  ;;  %p1627_p6 = scmp.eq.s32.totalorder %s1080_s8, 0 }
  0x1a   : > { %s119_s15 = ssub.s32 %s1495_s29, %s1970_s10  ;;  %s122_s16 = sadd.s32 1, %s1471_s23 }
  0x1b   : > { %s1974_s11 = smov (%p39_p5, %s1972_s11), 0  ;;  %p1641_p7 = por %p1627_p6, %p1918_p4 }
  0x1c   : > { %1937 = sst [smem:[#allocation17_spill]] %s1974_s11  ;;  %p120_p8 = scmp.eq.s32.totalorder %s119_s15, 0 }
  0x1d   : > { %s41_s18 = ssub.s32 %s1499_s30, %s1974_s11  ;;  %p129_p9 = scmp.ne.s32.totalorder %s1471_s23, %s1467_s22 }
  0x1e   : > { %p42_p10 = scmp.eq.s32.totalorder %s41_s18, 0  ;;  %p135_p11 = scmp.ne.s32.totalorder %s1467_s22, %s1463_s21 }
  0x1f   : > { %s1652_s19 = scalar_select %p120_p8, %s1471_s23, %s122_s16  }
  0x20   : > { %s1655_s20 = scalar_select %p42_p10, %s1483_s26, %s44_s12  }
  0x21   : > { %1939 = sst [smem:[#allocation18_spill]] %s1652_s19  ;;  %p1659_p12 = por %p129_p9, %p52_p2 }
  0x22   : > { %1940 = sst [smem:[#allocation19_spill]] %s1655_s20  ;;  %p1665_p13 = por %p135_p11, %p1627_p6 }
  0x23   : > { %p211_p0 = scmp.eq.s32.totalorder %s1080_s8, 5  ;;  %p217_p5 = scmp.eq.s32.totalorder %s1081_s9, 5 }
  0x24   : > { %p1945_p8 = scmp.ne.s32.totalorder %s1479_s25, %s1475_s24  ;;  %p1083_p2 = scmp.ge.s32.totalorder %s1503_s7, 6 }
  0x25   : > { %p1672_p4 = por %p211_p0, %p51_p1  ;;  %s237_s12 = sand.u32 (!%p1083_p2), 1, %s1483_s26  }
  0x26   : > { %p1679_p10 = por %p217_p5, %p1945_p8  ;;  %233 = sbr.rel (%p1083_p2) target bundleno = 97 (0x61), region = 16 }
  0x27   : > { %s1943_s15 = scalar_select %p1672_p4, 1, 0 }
  0x28   : > { %s1946_s21 = scalar_select %p1679_p10, 1, 0 }
  0x29   : > { %1944 = sst [smem:[#allocation20_spill]] %s1943_s15  ;;  %s1085_s8 = sshll.u32 (!%p1083_p2), %s1499_s30, 7 }
  0x2a   : > { %1947 = sst [smem:[#allocation21_spill]] %s1946_s21  ;;  %s1084_s9 = sshll.u32 (!%p1083_p2), %s237_s12, 3 }
  0x2b   : > { %s1948_s0 = sld [smem:[#allocation22_spill]]  ;;  %s241_s11 = scalar_lea.vmem [#allocation3], %s1084_s9 }
  0x2c   : > { %s248_s20 = sshll.u32 %s241_s11, 4  ;;  %s1690_s19 = sand.u32 1, %s1471_s23   ;;  %s249_s20 = int_to_ptr.vmem [resolvable:$true] %s248_s20 }
  0x2d   : > { %s238_s21 = scalar_lea.sflag [#allocation4], %s237_s12  ;;  %s1339_s24 = scalar_lea.vmem %s249_s20, 128 }
  0x2e   : > { %p1340_p1 = scmp.ne.s32.totalorder %s249_s20, %s1339_s24  ;;  %s1505_s15 = smov [#allocation3]  }
  0x2f   : > { %s1343_s5 = sshll.u32 %s1505_s15, 4  ;;  %s1344_s5 = int_to_ptr.vmem [resolvable:$false] %s1343_s5 }
  0x30   : > { %p1341_p6 = pnand %p1340_p1, %p1621_p3  ;;  %s1345_s30 = scalar_lea.vmem %s1344_s5, 256 }
  0x31   : > { %s246_s18 = scalar_lea.hbm %s1948_s0, %s1085_s8  ;;  %p1346_p11 = scmp.lt.s32.totalorder %s249_s20, %s1344_s5 }
  0x32   : > { %p1342_p9 = pneg %p1341_p6  ;;  %p1347_p0 = scmp.lt.s32.totalorder %s1345_s30, %s1339_s24 }
  0x34   : > { %p1348_p5 = por %p1347_p0, %p1346_p11 }
  0x36   : > { %p1349_p8 = pnand %p1348_p5, %p1342_p9 }
  0x38   : > { %1352 = shalt.err (!%p1349_p8)
}
  0x39   : > { %1196 = dma.hbm_to_vmem [thread:$0]  (%p1621_p3), %s246_s18, 128, %s249_s20, %s238_s21  }
  0x3a   : > { %s1192_s11 = smul.u32 40, %s1690_s19  ;;  %s1086_s12 = sshll.u32 %s1495_s29, 6 }
  0x3b   : > { %s1949_s3 = sld [smem:[#allocation23_spill]]  ;;  %s271_s5 = scalar_lea.sflag [#allocation7], %s1690_s19 }
  0x3c   : > { %s274_s14 = scalar_lea.vmem [#allocation6], %s1192_s11  ;;  %s1506_s30 = smov [#allocation6]  }
  0x3d   : > { %s280_s16 = sshll.u32 %s274_s14, 4  ;;  %s1369_s13 = sshll.u32 %s1506_s30, 4  ;;  %s281_s16 = int_to_ptr.vmem [resolvable:$true] %s280_s16  ;;  %s1370_s13 = int_to_ptr.vmem [resolvable:$false] %s1369_s13 }
  0x3e   : > { %s1365_s24 = scalar_lea.vmem %s281_s16, 640  ;;  %s1371_s0 = scalar_lea.vmem %s1370_s13, 1280 }
  0x3f   : > { %p1366_p2 = scmp.ne.s32.totalorder %s281_s16, %s1365_s24  ;;  %p1372_p3 = scmp.lt.s32.totalorder %s281_s16, %s1370_s13 }
  0x40   : > { %p1373_p9 = scmp.lt.s32.totalorder %s1371_s0, %s1365_s24 }
  0x41   : > { %s279_s15 = scalar_lea.hbm %s1949_s3, %s1086_s12  ;;  %p1367_p1 = pnand %p1366_p2, %p1659_p12 }
  0x42   : > { %p1374_p11 = por %p1373_p9, %p1372_p3 }
  0x43   : > { %p1368_p6 = pneg %p1367_p1 }
  0x45   : > { %p1375_p0 = pnand %p1374_p11, %p1368_p6 }
  0x47   : > { %1378 = shalt.err (!%p1375_p0)
}
  0x48   : > { %s1507_s20 = smov 192   ;;  %s1508_s21 = smov 64  }
  0x49   : > { %s1509_s18 = smov 4   ;;  %289 = sbr.rel (!%p1659_p12) target bundleno = 97 (0x61), region = 36 }
  0x4a   : > { %1197 = dma.hbm_to_vmem [thread:$0]  (%p1659_p12), %s279_s15, 640, %s281_s16, %s271_s5, %s1507_s20, %s1508_s21, %s1509_s18  }
  0x4b   : > { %s1193_s11 = smul.u32 (%p1659_p12), 80, %s1690_s19  ;;  %s1087_s12 = sshll.u32 (%p1659_p12), %s1495_s29, 2 }
  0x4c   : > { %s1950_s4 = sld [smem:[#allocation24_spill]] (%p1659_p12) }
  0x4d   : > { %s1717_s10 = scalar_lea.vmem (%p1659_p12), [#allocation8], %s1193_s11 }
  0x52   : > { %s1713_s0 = scalar_lea.vmem %s1950_s4, %s1087_s12 }
  0x53   : > { %v312_v0 = vld [vmem:[%s1713_s0] sm:$0xf]  ;;  %v314_v1 = vld [vmem:[%s1713_s0 + $0xc] sm:$0xf]  ;;  %v316_v2 = vld [vmem:[%s1713_s0 + $0x18] sm:$0xf] }
  0x54   : > { %313 = vst [vmem:[%s1717_s10] sm:$0xf] %v312_v0  ;;  %315 = vst [vmem:[%s1717_s10 + $0x4] sm:$0xf] %v314_v1  ;;  %v318_v3 = vld [vmem:[%s1713_s0 + $0x24] sm:$0xf] }
  0x55   : > { %v320_v4 = vld [vmem:[%s1713_s0 + $0x30] sm:$0xf]  ;;  %317 = vst [vmem:[%s1717_s10 + $0x8] sm:$0xf] %v316_v2  ;;  %319 = vst [vmem:[%s1717_s10 + $0xc] sm:$0xf] %v318_v3 }
  0x56   : > { %321 = vst [vmem:[%s1717_s10 + $0x10] sm:$0xf] %v320_v4  ;;  %v322_v5 = vld [vmem:[%s1713_s0 + $0x3c] sm:$0xf]  ;;  %v324_v6 = vld [vmem:[%s1713_s0 + $0x48] sm:$0xf] }
  0x57   : > { %v326_v7 = vld [vmem:[%s1713_s0 + $0x54] sm:$0xf]  ;;  %323 = vst [vmem:[%s1717_s10 + $0x14] sm:$0xf] %v322_v5  ;;  %325 = vst [vmem:[%s1717_s10 + $0x18] sm:$0xf] %v324_v6 }
  0x58   : > { %327 = vst [vmem:[%s1717_s10 + $0x1c] sm:$0xf] %v326_v7  ;;  %v328_v8 = vld [vmem:[%s1713_s0 + $0x60] sm:$0xf]  ;;  %v330_v9 = vld [vmem:[%s1713_s0 + $0x6c] sm:$0xf] }
  0x59   : > { %v332_v10 = vld [vmem:[%s1713_s0 + $0x78] sm:$0xf]  ;;  %329 = vst [vmem:[%s1717_s10 + $0x20] sm:$0xf] %v328_v8  ;;  %331 = vst [vmem:[%s1717_s10 + $0x24] sm:$0xf] %v330_v9 }
  0x5a   : > { %333 = vst [vmem:[%s1717_s10 + $0x28] sm:$0xf] %v332_v10  ;;  %v334_v11 = vld [vmem:[%s1713_s0 + $0x84] sm:$0xf]  ;;  %v336_v12 = vld [vmem:[%s1713_s0 + $0x90] sm:$0xf] }
  0x5b   : > { %v338_v13 = vld [vmem:[%s1713_s0 + $0x9c] sm:$0xf]  ;;  %335 = vst [vmem:[%s1717_s10 + $0x2c] sm:$0xf] %v334_v11  ;;  %337 = vst [vmem:[%s1717_s10 + $0x30] sm:$0xf] %v336_v12 }
  0x5c   : > { %339 = vst [vmem:[%s1717_s10 + $0x34] sm:$0xf] %v338_v13  ;;  %v340_v14 = vld [vmem:[%s1713_s0 + $0xa8] sm:$0xf]  ;;  %v342_v15 = vld [vmem:[%s1713_s0 + $0xb4] sm:$0xf] }
  0x5d   : > { %v344_v16 = vld [vmem:[%s1713_s0 + $0xc0] sm:$0xf]  ;;  %341 = vst [vmem:[%s1717_s10 + $0x38] sm:$0xf] %v340_v14  ;;  %343 = vst [vmem:[%s1717_s10 + $0x3c] sm:$0xf] %v342_v15 }
  0x5e   : > { %345 = vst [vmem:[%s1717_s10 + $0x40] sm:$0xf] %v344_v16  ;;  %v346_v17 = vld [vmem:[%s1713_s0 + $0xcc] sm:$0xf]  ;;  %v348_v18 = vld [vmem:[%s1713_s0 + $0xd8] sm:$0xf] }
  0x5f   : > { %v350_v19 = vld [vmem:[%s1713_s0 + $0xe4] sm:$0xf]  ;;  %347 = vst [vmem:[%s1717_s10 + $0x44] sm:$0xf] %v346_v17  ;;  %349 = vst [vmem:[%s1717_s10 + $0x48] sm:$0xf] %v348_v18 }
  0x60   : > { %351 = vst [vmem:[%s1717_s10 + $0x4c] sm:$0xf] %v350_v19 }
  0x61 PF: > { %p1088_p12 = scmp.ge.s32.totalorder %s1503_s7, 1  ;;  %p423_p5 = scmp.lt.s32.totalorder %s1503_s7, 7 }
  0x63   : > { %p424_p8 = pnand %p1088_p12, %p423_p5 }
  0x64   : > { %s1760_s19 = sand.u32 (!%p424_p8), 1, %s1479_s25  }
  0x65   : > { %427 = sbr.rel (%p424_p8) target bundleno = 607 (0x25f), region = 81  ;;  %s1089_s15 = sshll.u32 (!%p424_p8), %s1760_s19, 3 }
  0x66   : > { %s430_s14 = scalar_lea.sflag (!%p424_p8), [#allocation4], %s1760_s19  ;;  %s1764_s16 = scalar_lea.vmem (!%p424_p8), [#allocation3], %s1089_s15 }
  0x6a   : > { %1450 = dma.done.wait (%p1641_p7), %s430_s14, 128  }
  0x6b   : > { %1452 = vsyncadd (%p1641_p7), %s430_s14, 4294967168  ;;  %s438_s5 = sand.u32 1, %s1467_s22  }
  0x6c   : > { %s1194_s24 = smul.u32 40, %s438_s5  ;;  %s439_s30 = scalar_lea.sflag [#allocation7], %s438_s5 }
  0x6e   : > { %s1771_s13 = scalar_lea.vmem [#allocation6], %s1194_s24 }
  0x6f   : > { %1454 = dma.done.wait (%p1665_p13), %s439_s30, 640  }
  0x70   : > { %1456 = vsyncadd (%p1665_p13), %s439_s30, 4294966656  ;;  %s1195_s20 = smul.u32 80, %s438_s5  ;;  %p501_p2 = scmp.lt.s32.totalorder %s1491_s28, 1 }
  0x71   : > { %s1094_s21 = sshll.u32 %s1487_s27, 4  ;;  %s1951_s30 = sld [smem:[#allocation25_spill]] }
  0x72   : > { %p511_p1 = scmp.lt.s32.totalorder %s1094_s21, 47  ;;  %s1795_s4 = scalar_lea.vmem [#allocation8], %s1195_s20 }
  0x73   : > { %s502_s17 = scalar_select %p501_p2, %s1491_s28, 1 }
  0x74   : > { %s1976_s21 = smov (!%p511_p1, %s1094_s21), 47  ;;  %s1797_s29 = scalar_lea.vmem [#allocation9], %s1089_s15 }
  0x75   : > { %s1134_s18 = sshll.u32 %s502_s17, 4  ;;  %s1093_s11 = sshll.u32 %s502_s17, 3 }
  0x76   : > { %s1783_s9 = scalar_lea.vmem %s1910_s1, %s1134_s18  ;;  %s1788_s6 = scalar_lea.vmem %s1911_s2, %s1093_s11 }
  0x77   : > { %s1095_s14 = sshll.u32 %s1976_s21, 2  ;;  %p1096_p7 = scmp.ne.s32.totalorder %s1487_s27, 0 }
  0x78   : > { %s1793_s3 = scalar_lea.vmem %s1951_s30, %s1095_s14 }
  0x79   : > { %520 = sbr.rel (%p1096_p7) target bundleno = 128 (0x80), region = 97 }
  0x7e   : > { %vm521_vm0 = vcmask 326656   ;;  %v1510_v20 = vmov 0.0  }
  0x7f   : > { %522 = vst.msk [vmem:[#allocation2] sm:$0xff] %vm521_vm0, %v1510_v20 }
  0x80 PF: > { %v1303_v21 = vld [vmem:[%s1771_s13 + $0x10] ss:$0 sps:$4 sm:$0xff]   ;;  %vm553_vm1 = vcmask 1043456   ;;  %v1511_v22 = vmov 0.0   ;;  %v1304_v23 = vld [vmem:[%s1771_s13 + $0x24] ss:$0 sps:$4 sm:$0xff]  }
  0x81   : > { %1152 = vmatprep.subr.bf16.mxu0 %v1511_v22  ;;  %1162 = vmatprep.subr.bf16.mxu1 %v1511_v22  ;;  %v555_v24 = vsel %vm553_vm1, %v1303_v21, 0  ;;  %v619_v25 = vsel %vm553_vm1, %v1304_v23, 0  ;;  %v1305_v26 = vld [vmem:[%s1771_s13 + $0x8] sm:$0xff]   ;;  %v1306_v27 = vld [vmem:[%s1771_s13 + $0x1c] sm:$0xff]   ;;  %vm1512_vm2 = vmmov 0   ;;  %v1513_v29 = vmov 0  }
  0x82   : > { %1153 = vmatpush3.bf16.msra.mxu0 %v555_v24  ;;  %1163 = vmatpush3.bf16.msra.mxu1 %v619_v25  ;;  %v1307_v28 = vld [vmem:[%s1771_s13] sm:$0xff]   ;;  %v523_v30 = vld [vmem:[%s1764_s16] sm:$0xff]  ;;  %vm549_vm3 = vcmask 326656   ;;  %vm742_vm4 = vcmask 261120   ;;  %p1129_p13 = scmp.ne.s32.totalorder %s1487_s27, 2 }
  0x83   : > { %1154 = vmatprep.subr.bf16.mxu0 %v1511_v22  ;;  %1164 = vmatprep.subr.bf16.mxu1 %v1511_v22  ;;  %v1308_v31 = vld [vmem:[%s1771_s13 + $0x14] sm:$0xff]   ;;  %v524_v32 = vpack.c.bf16 %v523_v30, %v523_v30  ;;  %v1310_v34 = vld [vmem:[%s1795_s4 + $0x30] sm:$0xff]   ;;  %v786_v36 = vld [vmem:[%s1788_s6] sm:$0xff] }
  0x84   : > { %1158 = vmatprep.mubr.msk.bf16.mxu0 %vm1512_vm2, %v1511_v22  ;;  %1168 = vmatprep.mubr.msk.bf16.mxu1 %vm1512_vm2, %v1511_v22  ;;  %v1309_v33 = vld [vmem:[%s1795_s4 + $0x38] sm:$0xff]   ;;  %v526_v35 = vld [vmem:[%s1783_s9 + $0x8] sm:$0xff]  ;;  %v1311_v37 = vld [vmem:[%s1795_s4 + $0x28] sm:$0xff]  }
  0x85   : > { %1302 = vset.pattern.permute.xlu0 %v1513_v29  ;;  %v528_v38 = vpack.c.bf16 %v526_v35, %v526_v35  ;;  %v1312_v39 = vld [vmem:[%s1795_s4 + $0x20] sm:$0xff]   ;;  %v1313_v40 = vld [vmem:[%s1795_s4 + $0x18] sm:$0xff]   ;;  %v1314_v41 = vld [vmem:[%s1795_s4 + $0x10] sm:$0xff]  }
  0x86   : > { %1155 = vmatpush3.bf16.msra.mxu0 %v1305_v26  ;;  %1165 = vmatpush3.bf16.msra.mxu1 %v1306_v27  ;;  %v1315_v42 = vld [vmem:[%s1795_s4 + $0x8] sm:$0xff]   ;;  %v1316_v43 = vld [vmem:[%s1795_s4] sm:$0xff]  }
  0x87   : > { %1156 = vmatprep.subr.bf16.mxu0 %v1511_v22  ;;  %1166 = vmatprep.subr.bf16.mxu1 %v1511_v22  ;;  %v1317_v44 = vld [vmem:[%s1795_s4 + $0x48] sm:$0xff]   ;;  %v1318_v45 = vld [vmem:[%s1795_s4 + $0x40] sm:$0xff]  }
  0x88   : > { %789 = vperm.xlu0 %1302, %v786_v36   ;;  %v525_v46 = vld [vmem:[%s1783_s9] sm:$0xff]  ;;  %v1319_v48 = vld [vmem:[%s1793_s3 + $0x38] sm:$0xff]   ;;  %v1320_v49 = vld [vmem:[%s1793_s3 + $0x30] sm:$0xff]  }
  0x89   : > { %v527_v47 = vpack.c.bf16 %v525_v46, %v525_v46  ;;  %v1321_v50 = vld [vmem:[%s1793_s3 + $0x28] sm:$0xff]   ;;  %v1322_v51 = vld [vmem:[%s1793_s3 + $0x20] sm:$0xff]   ;;  %v1323_v52 = vld [vmem:[%s1793_s3 + $0x18] sm:$0xff]  }
  0x8a   : > { %1157 = vmatpush3.bf16.msra.mxu0 %v1307_v28  ;;  %1167 = vmatpush3.bf16.msra.mxu1 %v1308_v31  ;;  %v1324_v53 = vld [vmem:[%s1793_s3 + $0x10] sm:$0xff]   ;;  %v1325_v54 = vld [vmem:[%s1793_s3 + $0x8] sm:$0xff]   ;;  %v1326_v55 = vld [vmem:[%s1793_s3] sm:$0xff]  }
  0x8b   : > { %746 = vmatprep.subr.bf16.mxu0 %v1513_v29  ;;  %1172 = vmatprep.subr.bf16.mxu1 %v1511_v22  ;;  %v794_v9 = vld [vmem:[#allocation2] sm:$0xff] }
  0x8d   : > { %1159 = vmatmul.mubr.msk.bf16.vlgmr.msra.gmra.mxu0 %vm549_vm3, %v524_v32  ;;  %1169 = vmatmul.mubr.msk.bf16.vlgmr.msra.gmra.mxu1 %vm549_vm3, %v524_v32 }
  0x8e   : > { %747 = vmatpush1.bf16.msra.mxu0 %v1309_v33  ;;  %1188 = vmatprep.mubr.msk.bf16.mxu1 %vm1512_vm2, %v1511_v22 }
  0x8f   : > { %748 = vmatprep.subr.bf16.mxu0 %v1513_v29  ;;  %1120 = vmatprep.mubr.msk.bf16.mxu0 %vm742_vm4, %v528_v38 }
  0x90   : > { %1173 = vmatpush3.bf16.msra.mxu1 %v1319_v48 }
  0x91   : > { %1174 = vmatprep.subr.bf16.mxu1 %v1511_v22 }
  0x92   : > { %749 = vmatpush1.bf16.msra.mxu0 %v1310_v34 }
  0x93   : > { %750 = vmatprep.subr.bf16.mxu0 %v1513_v29 }
  0x94   : > { %1175 = vmatpush3.bf16.msra.mxu1 %v1320_v49 }
  0x95   : > { %1176 = vmatprep.subr.bf16.mxu1 %v1511_v22 }
  0x96   : > { %751 = vmatpush1.bf16.msra.mxu0 %v1311_v37 }
  0x97   : > { %752 = vmatprep.subr.bf16.mxu0 %v1513_v29 }
  0x98   : > { %1177 = vmatpush3.bf16.msra.mxu1 %v1321_v50 }
  0x99   : > { %1178 = vmatprep.subr.bf16.mxu1 %v1511_v22 }
  0x9a   : > { %753 = vmatpush1.bf16.msra.mxu0 %v1312_v39 }
  0x9b   : > { %754 = vmatprep.subr.bf16.mxu0 %v1513_v29 }
  0x9c   : > { %1179 = vmatpush3.bf16.msra.mxu1 %v1322_v51 }
  0x9d   : > { %1180 = vmatprep.subr.bf16.mxu1 %v1511_v22 }
  0x9e   : > { %755 = vmatpush1.bf16.msra.mxu0 %v1313_v40 }
  0x9f   : > { %756 = vmatprep.subr.bf16.mxu0 %v1513_v29 }
  0xa0   : > { %1181 = vmatpush3.bf16.msra.mxu1 %v1323_v52 }
  0xa1   : > { %1182 = vmatprep.subr.bf16.mxu1 %v1511_v22 }
  0xa2   : > { %757 = vmatpush1.bf16.msra.mxu0 %v1314_v41 }
  0xa3   : > { %758 = vmatprep.subr.bf16.mxu0 %v1513_v29 }
  0xa4   : > { %1183 = vmatpush3.bf16.msra.mxu1 %v1324_v53 }
  0xa5   : > { %1184 = vmatprep.subr.bf16.mxu1 %v1511_v22 }
  0xa6   : > { %759 = vmatpush1.bf16.msra.mxu0 %v1315_v42 }
  0xa7   : > { %760 = vmatprep.subr.bf16.mxu0 %v1513_v29 }
  0xa8   : > { %1185 = vmatpush3.bf16.msra.mxu1 %v1325_v54 }
  0xa9   : > { %1186 = vmatprep.subr.bf16.mxu1 %v1511_v22 }
  0xaa   : > { %761 = vmatpush1.bf16.msra.mxu0 %v1316_v43 }
  0xab   : > { %774 = vmatprep.subr.bf16.mxu0 %v1513_v29 }
  0xac   : > { %1187 = vmatpush3.bf16.msra.mxu1 %v1326_v55 }
  0xae   : > { %775 = vmatpush2.bf16.msra.mxu0 %v1317_v44 }
  0xaf   : > { %776 = vmatprep.subr.bf16.mxu0 %v1513_v29 }
  0xb2   : > { %777 = vmatpush2.bf16.msra.mxu0 %v1318_v45 }
  0xb5   : > { %779 = vmatmul.mubr.bf16.vlgmr.msra.gmra.mxu0 %v527_v47 }
 0x103   : > { %v790_v0 = vpop.permute.xlu0 %789 }
 0x14d   : > { %v591_v56 = vpop.f32.mrf.mxu0  ;;  %v655_v57 = vpop.f32.mrf.mxu1 }
 0x14e   : > { %v661_v2 = vmul.f32 %v655_v57, %v591_v56 }
 0x14f   : > { %v1160_v58 = vpop.f32.mrf.mxu0  ;;  %v1170_v59 = vpop.f32.mrf.mxu1 }
 0x151   : > { %v594_v60 = vpop.f32.mrf.mxu0  ;;  %v658_v61 = vpop.f32.mrf.mxu1 }
 0x153   : > { %v1161_v62 = vpop.f32.mrf.mxu0  ;;  %v1171_v63 = vpop.f32.mrf.mxu1 }
 0x175   : > { %v780_v1 = vpop.f32.mrf.mxu0 }
 0x176   : > { %v792_v3 = vmul.f32 %v790_v0, %v780_v1 }
 0x177   : > { %v782_v4 = vpop.f32.mrf.mxu0 }
 0x178   : > { %v793_v5 = vmul.f32 %v792_v3, %v661_v2 }
 0x179   : > { %v783_v6 = vpop.f32.mrf.mxu0 }
 0x17a   : > { %v795_v7 = vpack.c.bf16 %v793_v5, %v793_v5 }
 0x17b   : > { %v784_v8 = vpop.f32.mrf.mxu0 }
 0x17c   : > { %1189 = vmatmul.mubr.bf16.vlgmr.msra.gmra.mxu1 %v795_v7 }
 0x23c   : > { %v894_v10 = vpop.f32.mrf.mxu1 }
 0x23d   : > { %v900_v11 = vadd.f32 %v894_v10, %v794_v9 }
 0x23e   : > { %v1190_v12 = vpop.f32.mrf.mxu1  ;;  %905 = sbr.rel (%p1129_p13) target bundleno = 584 (0x248), region = 101 }
 0x23f   : > { %901 = vst.msk [vmem:[#allocation2] sm:$0xff] %vm549_vm3, %v900_v11 }
 0x240   : > { %v897_v13 = vpop.f32.mrf.mxu1 }
 0x242   : > { %v1191_v14 = vpop.f32.mrf.mxu1 }
 0x246   : > { %v906_v15 = vld [vmem:[#allocation2] sm:$0xff] }
 0x247   : > { %907 = vst.msk [vmem:[%s1797_s29] sm:$0xff] %vm549_vm3, %v906_v15 }
 0x248 PF: > { %s1131_s4 = sshll.u32 %s1491_s28, 7  ;;  %s1953_s13 = sld [smem:[#allocation26_spill]] }
 0x249   : > { %s922_s21 = sshll.u32 %s1797_s29, 4  ;;  %s909_s17 = scalar_lea.sflag [#allocation5], %s1760_s19  ;;  %s923_s21 = int_to_ptr.vmem [resolvable:$true] %s922_s21 }
 0x24a   : > { %s1379_s18 = scalar_lea.vmem %s923_s21, 128  ;;  %s1514_s27 = smov [#allocation9]  }
 0x24b   : > { %p1380_p6 = scmp.ne.s32.totalorder %s923_s21, %s1379_s18  ;;  %s1383_s11 = sshll.u32 %s1514_s27, 4  ;;  %s1384_s11 = int_to_ptr.vmem [resolvable:$false] %s1383_s11 }
 0x24c   : > { %s1385_s12 = scalar_lea.vmem %s1384_s11, 256  ;;  %p1386_p11 = scmp.lt.s32.totalorder %s923_s21, %s1384_s11 }
 0x24d   : > { %p1381_p3 = pnand %p1380_p6, %p1672_p4  ;;  %p1387_p0 = scmp.lt.s32.totalorder %s1385_s12, %s1379_s18 }
 0x24e   : > { %s920_s20 = scalar_lea.hbm %s1953_s13, %s1131_s4 }
 0x24f   : > { %p1382_p9 = pneg %p1381_p3  ;;  %p1388_p12 = por %p1387_p0, %p1386_p11 }
 0x251   : > { %p1389_p5 = pnand %p1388_p12, %p1382_p9 }
 0x253   : > { %1392 = shalt.err (!%p1389_p5)
}
 0x254   : > { %s1393_s28 = scalar_lea.hbm %s920_s20, 128  ;;  %s1397_s8 = scalar_lea.hbm %s1953_s13, 256 }
 0x255   : > { %p1394_p8 = scmp.ne.s32.totalorder %s920_s20, %s1393_s28  ;;  %p1398_p7 = scmp.lt.s32.totalorder %s920_s20, %s1953_s13 }
 0x256   : > { %p1399_p13 = scmp.lt.s32.totalorder %s1397_s8, %s1393_s28 }
 0x257   : > { %p1395_p2 = pnand %p1394_p8, %p1672_p4 }
 0x258   : > { %p1400_p6 = por %p1399_p13, %p1398_p7 }
 0x259   : > { %p1396_p1 = pneg %p1395_p2 }
 0x25b   : > { %p1401_p3 = pnand %p1400_p6, %p1396_p1 }
 0x25d   : > { %1404 = shalt.err (!%p1401_p3)
}
 0x25e   : > { %1200 = dma.vmem_to_hbm [thread:$0]  (%p1672_p4), %s923_s21, 128, %s920_s20, %s909_s17  }
 0x25f PF: > { %s1954_s10 = sld [smem:[#allocation13_spill]]  ;;  %p1206_p9 = scmp.ge.s32.totalorder %s1503_s7, 2 }
 0x261   : > { %p1203_p11 = pnand %p1206_p9, %p1679_p10 }
 0x263   : > { %p1204_p0 = pneg %p1203_p11 }
 0x265   : > { %s934_s14 = sand.u32 1, %s1954_s10  }
 0x266   : > { %s935_s24 = scalar_lea.sflag [#allocation5], %s934_s14 }
 0x267   : > { %1458 = dma.done.wait (%p1204_p0), %s935_s24, 128  }
 0x268   : > { %1460 = vsyncadd (%p1204_p0), %s935_s24, 4294967168  ;;  %s25_s7 = sadd.s32 1, %s1503_s7   ;;  %s1956_s5 = sld [smem:[#allocation18_spill]] }
 0x269   : > { %p22_p12 = scmp.ge.s32.totalorder %s25_s7, 8   ;;  %s1957_s30 = sld [smem:[#allocation19_spill]] }
 0x26a   : > { %s1958_s27 = sld [smem:[#allocation14_spill]]  ;;  %s1962_s21 = smov %s1467_s22 }
 0x26b   : > { %s1959_s28 = sld [smem:[#allocation15_spill]]  ;;  %s1963_s22 = smov %s1471_s23 }
 0x26c   : > { %s1960_s29 = sld [smem:[#allocation16_spill]]  ;;  %s1965_s24 = smov %s1479_s25 }
 0x26d   : > { %s1961_s3 = sld [smem:[#allocation17_spill]]  ;;  %s1966_s25 = smov %s1483_s26 }
 0x26e   : > { %s1964_s23 = smov %s1956_s5 }
 0x26f   : > { %s1967_s26 = smov %s1957_s30  ;;  %24 = sbr.rel (!%p22_p12) target bundleno = 17 (0x11), region = 169 }
 0x273   : > { %s1968_s30 = smov %s1961_s3 }
 0x274   :  { %940 = vsyncpa [#allocation4], 1 }
 0x275   :  { %942 = vsyncpa [#allocation4 + $0x1], 1 }
 0x276   :  { %943 = vsyncpa [#allocation7], 1 }
 0x277   :  { %945 = vsyncpa [#allocation7 + $0x1], 1 }
 0x278   :  { %946 = vsyncpa [#allocation5], 1 }
 0x279   :  { %948 = vsyncpa [#allocation5 + $0x1], 1 }

</bundles_post_ra>
